<compile_context>
chip_gen: v6e
topology: v6e:2x2x1
jax: 0.10.0
libtpu: 0.0.40
codegen_flags: <defaults>
</compile_context>

<pallas_src>
import functools

import jax
import jax.numpy as jnp
from jax.experimental import pallas as pl
from jax.experimental.pallas import tpu as pltpu

TEMPERATURE = 0.05
INV_TEMPERATURE = 1.0 / TEMPERATURE
_NEG_PAD = -1e30                      # finite padding logit -> exp() == 0, no NaN
_VMEM_LIMIT = 48 * 1024 * 1024        # safe on v7x (64 MiB), > default on v5e/v6e
_WS_BUDGET = 28 * 1024 * 1024         # target double-buffered working set


def _round_up(x, m):
    return (x + m - 1) // m * m


def _cdiv(a, b):
    return (a + b - 1) // b


def _fused_kernel(q_ref, x_ref, anchors_ref, p_ref):
    """Fast path (n_k == 1): full softmax + matmul in one grid step per anchor tile."""
    logits = q_ref[...].astype(jnp.float32) * INV_TEMPERATURE
    m = jnp.max(logits, axis=-1, keepdims=True)
    e = jnp.exp(logits - m)
    l = jnp.sum(e, axis=-1, keepdims=True)
    p = e * (1.0 / l)                      # exact reciprocal (correctness fix)
    p_ref[...] = p
    anchors_ref[...] = jnp.dot(
        p.astype(jnp.bfloat16), x_ref[...],  # X already bf16 in HBM
        preferred_element_type=jnp.float32)


def _tiled_kernel(m_ref, q_ref, x_ref, anchors_ref, p_ref, l_ref, l_s):
    """Streaming path (n_k > 1): single pass over N tiles, row max precomputed."""
    k = pl.program_id(1)

    @pl.when(k == 0)
    def _init():
        l_s[...] = jnp.zeros(l_s.shape, l_s.dtype)
        anchors_ref[...] = jnp.zeros(anchors_ref.shape, anchors_ref.dtype)

    logits = q_ref[...].astype(jnp.float32) * INV_TEMPERATURE
    e = jnp.exp(logits - m_ref[...])         # one exp per element, total
    l_s[...] += jnp.sum(e, axis=-1, keepdims=True)
    p_ref[...] = e                           # unnormalized; scaled in the wrapper
    anchors_ref[...] += jnp.dot(             # bf16 MXU operands, f32 accumulation
        e.astype(jnp.bfloat16), x_ref[...],
        preferred_element_type=jnp.float32)

    @pl.when(k == pl.num_programs(1) - 1)
    def _finalize():
        l = jnp.maximum(l_s[...], 1e-30)     # guard padded anchor rows (l == 0)
        anchors_ref[...] *= (1.0 / l)        # exact reciprocal
        l_ref[...] = l


@functools.partial(jax.jit, static_argnames=("tile_n", "tile_a"))
def anchor_selector(Q, X, *, tile_n=2048, tile_a=256):
    """Q: [N_anchors, N] parameter; X: [N, D] embeddings.
    Returns (anchors [N_anchors, D] f32, P [N_anchors, N] f32)."""
    A, N = Q.shape
    N2, D = X.shape
    assert N == N2

    # ---- anchor-tile geometry: balanced tiles, >= 2 tiles for v7x megacore ----
    A8 = _round_up(A, 8)
    n_a = max(_cdiv(A8, tile_a), 2)
    n_a = max(min(n_a, A8 // 8), 1)
    TA = _round_up(_cdiv(A8, n_a), 8)
    A_pad = _round_up(A8, TA)
    n_a = A_pad // TA

    # ---- D padding: 256-wide MXU on v6e/v7x when D is large enough ----
    D_pad = _round_up(D, 256) if D > 128 else _round_up(D, 128)

    # ---- N-tile: biggest 128-multiple whose working set fits the VMEM budget ----
    N128 = _round_up(N, 128)
    TN = min(_round_up(tile_n, 128), N128)

    def ws_bytes(tn):
        return (2 * TA * tn * 4        # Q blocks (f32, double-buffered)
                + 2 * tn * D_pad * 2   # X blocks (bf16, double-buffered)
                + 2 * TA * tn * 4      # P output blocks (f32)
                + 2 * TA * D_pad * 4)  # resident f32 anchors accumulator

    while TN > 128 and ws_bytes(TN) > _WS_BUDGET:
        TN = _round_up(TN // 2, 128)
    # TODO(synk): tile D as an extra grid axis if ws_bytes(128) still exceeds the
    # budget (only matters for very large D on v7x's 64 MiB VMEM).

    N_pad = _round_up(N, TN)
    n_k = N_pad // TN

    Qp = jnp.pad(Q.astype(jnp.float32), ((0, A_pad - A), (0, N_pad - N)),
                 constant_values=_NEG_PAD)
    Xp = jnp.pad(X.astype(jnp.float32), ((0, N_pad - N), (0, D_pad - D))
                 ).astype(jnp.bfloat16)   # bf16 X in HBM: half the DMA bytes

    if n_k == 1:
        cost = pl.CostEstimate(
            flops=2 * A_pad * N_pad * D_pad + 6 * A_pad * N_pad,
            transcendentals=A_pad * N_pad,
            bytes_accessed=(4 * A_pad * N_pad + 2 * N_pad * D_pad
                            + 4 * A_pad * N_pad + 4 * A_pad * D_pad))
        anchors_p, P_p = pl.pallas_call(
            _fused_kernel,
            out_shape=(jax.ShapeDtypeStruct((A_pad, D_pad), jnp.float32),
                       jax.ShapeDtypeStruct((A_pad, N_pad), jnp.float32)),
            grid=(n_a,),
            in_specs=[pl.BlockSpec((TA, N_pad), lambda a: (a, 0)),
                      pl.BlockSpec((N_pad, D_pad), lambda a: (0, 0))],
            out_specs=(pl.BlockSpec((TA, D_pad), lambda a: (a, 0)),
                       pl.BlockSpec((TA, N_pad), lambda a: (a, 0))),
            compiler_params=pltpu.CompilerParams(
                dimension_semantics=("parallel",),
                vmem_limit_bytes=_VMEM_LIMIT),
            cost_estimate=cost,
        )(Qp, Xp)
        return anchors_p[:A, :D], P_p[:A, :N]

    # n_k > 1: precompute the per-row max in the wrapper (XLA streams Q once).
    m = jnp.max(Q.astype(jnp.float32), axis=1, keepdims=True) * INV_TEMPERATURE
    m_pad = jnp.pad(m, ((0, A_pad - A), (0, 0)))

    cost = pl.CostEstimate(
        flops=2 * A_pad * N_pad * D_pad + 6 * A_pad * N_pad,
        transcendentals=A_pad * N_pad,
        bytes_accessed=(4 * A_pad * N_pad             # Q read once
                        + n_a * 2 * N_pad * D_pad     # bf16 X re-streamed per a-tile
                        + 4 * A_pad * N_pad           # P written once
                        + 4 * A_pad * D_pad           # anchors
                        + 4 * A_pad * (n_k + 1)))     # m reads + l write

    anchors_p, P_p, l_p = pl.pallas_call(
        _tiled_kernel,
        out_shape=(jax.ShapeDtypeStruct((A_pad, D_pad), jnp.float32),
                   jax.ShapeDtypeStruct((A_pad, N_pad), jnp.float32),
                   jax.ShapeDtypeStruct((A_pad, 1), jnp.float32)),
        grid=(n_a, n_k),
        in_specs=[pl.BlockSpec((TA, 1), lambda a, k: (a, 0)),      # row max
                  pl.BlockSpec((TA, TN), lambda a, k: (a, k)),     # Q tile
                  pl.BlockSpec((TN, D_pad), lambda a, k: (k, 0))], # X tile (bf16)
        out_specs=(pl.BlockSpec((TA, D_pad), lambda a, k: (a, 0)), # resident acc
                   pl.BlockSpec((TA, TN), lambda a, k: (a, k)),    # P tile
                   pl.BlockSpec((TA, 1), lambda a, k: (a, 0))),    # exp-sum l
        scratch_shapes=[pltpu.VMEM((TA, 1), jnp.float32)],
        compiler_params=pltpu.CompilerParams(
            dimension_semantics=("parallel", "arbitrary"),
            vmem_limit_bytes=_VMEM_LIMIT),
        cost_estimate=cost,
    )(m_pad, Qp, Xp)

    anchors = anchors_p[:A, :D]
    P = P_p[:A, :N] / l_p[:A]        # exact normalization (fuses with the slice)
    return anchors, P


def _reference(Q, X):
    P = jax.nn.softmax(Q / TEMPERATURE, axis=1)
    return P @ X, P


if __name__ == "__main__":
    key = jax.random.PRNGKey(0)
    k_q, k_x, k_q2, k_x2 = jax.random.split(key, 4)

    # 1) small shapes consistent with the module (single N-tile fast path)
    N_anchors, N, D = 8, 16, 32
    Q = jax.random.normal(k_q, (N_anchors, N), dtype=jnp.float32)   # nn.Parameter(randn)
    X = jax.random.normal(k_x, (N, D), dtype=jnp.float32)

    anchors, P = jax.block_until_ready(anchor_selector(Q, X))
    ref_anchors, ref_P = _reference(Q, X)
    assert anchors.shape == (N_anchors, D) and P.shape == (N_anchors, N)
    # P is exact f32 softmax now (no approx reciprocal).
    assert jnp.allclose(P, ref_P, atol=1e-3, rtol=1e-3), \
        float(jnp.max(jnp.abs(P - ref_P)))
    # anchors use bf16 MXU operands with f32 accumulation.
    assert jnp.allclose(anchors, ref_anchors, atol=3e-2, rtol=3e-2), \
        float(jnp.max(jnp.abs(anchors - ref_anchors)))
    assert jnp.allclose(P.sum(axis=1), jnp.ones((N_anchors,), jnp.float32), atol=1e-3)

    # 2) exercise the multi-tile streaming path (forced small N-tile)
    A_b, N_b, D_b = 12, 300, 40
    Q2 = jax.random.normal(k_q2, (A_b, N_b), dtype=jnp.float32)
    X2 = jax.random.normal(k_x2, (N_b, D_b), dtype=jnp.float32)
    anchors2, P2 = jax.block_until_ready(anchor_selector(Q2, X2, tile_n=128))
    ref_anchors2, ref_P2 = _reference(Q2, X2)
    assert anchors2.shape == (A_b, D_b) and P2.shape == (A_b, N_b)
    assert jnp.allclose(P2, ref_P2, atol=1e-3, rtol=1e-3), \
        float(jnp.max(jnp.abs(P2 - ref_P2)))
    assert jnp.allclose(anchors2, ref_anchors2, atol=3e-2, rtol=3e-2), \
        float(jnp.max(jnp.abs(anchors2 - ref_anchors2)))
    assert jnp.allclose(P2.sum(axis=1), jnp.ones((A_b,), jnp.float32), atol=1e-3)

    print("KERNEL_OK")
</pallas_src>

<mosaic_0001>
module attributes {stable_mosaic.version = 11 : i64} {
  func.func @_fused_kernel(%arg0: i32, %arg1: memref<8x128xf32, #tpu.memory_space<vmem>>, %arg2: memref<128x128xbf16, #tpu.memory_space<vmem>>, %arg3: memref<8x128xf32, #tpu.memory_space<vmem>>, %arg4: memref<8x128xf32, #tpu.memory_space<vmem>>) attributes {dimension_semantics = [#tpu.dimension_semantics<parallel>], iteration_bounds = array<i64: 1>, scalar_prefetch = 0 : i64, scratch_operands = 0 : i64, tpu.core_type = #tpu.core_type<tc>, window_params = [{transform_indices = @transform_0, window_bounds = array<i64: 8, 128>}, {pipeline_mode = #tpu.pipeline_mode<synchronous>, transform_indices = @transform_1, window_bounds = array<i64: 128, 128>}, {transform_indices = @transform_2, window_bounds = array<i64: 8, 128>}, {transform_indices = @transform_3, window_bounds = array<i64: 8, 128>}]} {
    %c0 = arith.constant 0 : index
    %c0_0 = arith.constant 0 : index
    %0 = vector.load %arg1[%c0, %c0_0] : memref<8x128xf32, #tpu.memory_space<vmem>>, vector<8x128xf32>
    %cst = arith.constant 2.000000e+01 : f32
    %1 = vector.broadcast %cst : f32 to vector<8x128xf32>
    %2 = arith.mulf %0, %1 : vector<8x128xf32>
    %cst_1 = arith.constant dense<0xFF800000> : vector<8xf32>
    %3 = vector.multi_reduction <maximumf>, %2, %cst_1 [1] : vector<8x128xf32> to vector<8xf32>
    %4 = vector.shape_cast %3 : vector<8xf32> to vector<8x1xf32>
    %5 = vector.broadcast %4 : vector<8x1xf32> to vector<8x128xf32>
    %6 = arith.subf %2, %5 : vector<8x128xf32>
    %7 = math.exp %6 : vector<8x128xf32>
    %cst_2 = arith.constant dense<0.000000e+00> : vector<8xf32>
    %8 = vector.multi_reduction <add>, %7, %cst_2 [1] : vector<8x128xf32> to vector<8xf32>
    %9 = vector.shape_cast %8 : vector<8xf32> to vector<8x1xf32>
    %cst_3 = arith.constant 1.000000e+00 : f32
    %10 = vector.broadcast %cst_3 : f32 to vector<8x1xf32>
    %11 = arith.divf %10, %9 : vector<8x1xf32>
    %12 = vector.broadcast %11 : vector<8x1xf32> to vector<8x128xf32>
    %13 = arith.mulf %7, %12 : vector<8x128xf32>
    %c0_4 = arith.constant 0 : index
    %c0_5 = arith.constant 0 : index
    %14 = vector.load %arg4[%c0_4, %c0_5] : memref<8x128xf32, #tpu.memory_space<vmem>>, vector<8x128xf32>
    tpu.vector_store %arg4[%c0_4, %c0_5], %13 {strides = array<i32>} : memref<8x128xf32, #tpu.memory_space<vmem>>, vector<8x128xf32>,
    %15 = arith.truncf %13 : vector<8x128xf32> to vector<8x128xbf16>
    %c0_6 = arith.constant 0 : index
    %c0_7 = arith.constant 0 : index
    %16 = vector.load %arg2[%c0_6, %c0_7] : memref<128x128xbf16, #tpu.memory_space<vmem>>, vector<128x128xbf16>
    %cst_8 = arith.constant dense<0.000000e+00> : vector<8x128xf32>
    %17 = tpu.matmul %15, %16, %cst_8 {dimension_numbers = #tpu.dot_dimension_numbers<[1], [0], [0], [1], [0, 0, 1, 1], [], []>} : vector<8x128xbf16>, vector<128x128xbf16>, vector<8x128xf32> -> vector<8x128xf32>
    %c0_9 = arith.constant 0 : index
    %c0_10 = arith.constant 0 : index
    %18 = vector.load %arg3[%c0_9, %c0_10] : memref<8x128xf32, #tpu.memory_space<vmem>>, vector<8x128xf32>
    tpu.vector_store %arg3[%c0_9, %c0_10], %17 {strides = array<i32>} : memref<8x128xf32, #tpu.memory_space<vmem>>, vector<8x128xf32>,
    return
  }
  func.func @transform_0(%arg0: i32) -> (i32, i32) {
    %c0_i32 = arith.constant 0 : i32
    %c0_i32_0 = arith.constant 0 : i32
    return %arg0, %c0_i32 : i32, i32
  }
  func.func @transform_1(%arg0: i32) -> (i32, i32) {
    %c0_i32 = arith.constant 0 : i32
    %c0_i32_0 = arith.constant 0 : i32
    %c0_i32_1 = arith.constant 0 : i32
    return %c0_i32, %c0_i32_0 : i32, i32
  }
  func.func @transform_2(%arg0: i32) -> (i32, i32) {
    %c0_i32 = arith.constant 0 : i32
    %c0_i32_0 = arith.constant 0 : i32
    return %arg0, %c0_i32 : i32, i32
  }
  func.func @transform_3(%arg0: i32) -> (i32, i32) {
    %c0_i32 = arith.constant 0 : i32
    %c0_i32_0 = arith.constant 0 : i32
    return %arg0, %c0_i32 : i32, i32
  }
}

</mosaic_0001>

<bundles_post_ra>
// kernel: anchor_selector.1
= control target key start
LH: loop header
LB: loop body
LE: loop exit
PB: predicated region body
PF: predicated region fallthrough
CT: control target
= control target key end

     0   :  { %9 = vsyncpa [#allocation3], 0  ;;  %s317_s0 = inlined_call_operand.vmem [shape: f32[8,128], index: 0, kind: input, shape index: {}]   ;;  %s318_s1 = inlined_call_operand.vmem [shape: bf16[128,128], index: 1, kind: input, shape index: {}]   ;;  %s319_s2 = inlined_call_operand.hbm [shape: f32[8,128], index: 2, kind: output, shape index: {0}]   ;;  %s320_s3 = inlined_call_operand.hbm [shape: f32[8,128], index: 3, kind: output, shape index: {1}]  }
   0x1   :  { %v16_v0 = vld [vmem:[%s317_s0] sm:$0xff] }
   0x2   :  { %v17_v1 = vmul.f32 20.0, %v16_v0 }
   0x4   :  { %18 = vmax.xlane.f32.xlu0 %v17_v1 }
   0x5   :  { %10 = vsyncpa [#allocation5], 0  ;;  %v204_v2 = vld [vmem:[%s318_s1 + $0x38] sm:$0xff]   ;;  %v260_v3 = vmov 0.0   ;;  %v205_v4 = vld [vmem:[%s318_s1 + $0x30] sm:$0xff]   ;;  %vm261_vm0 = vmmov 0  }
   0x6   :  { %180 = vmatprep.subr.bf16.mxu0 %v260_v3  ;;  %v206_v5 = vld [vmem:[%s318_s1 + $0x28] sm:$0xff]   ;;  %v207_v6 = vld [vmem:[%s318_s1 + $0x20] sm:$0xff]   ;;  %v208_v11 = vld [vmem:[%s318_s1 + $0x18] sm:$0xff]   ;;  %196 = vmatprep.mubr.msk.bf16.mxu0 %vm261_vm0, %v260_v3  ;;  %s262_s29 = smov [#allocation4]  }
   0x7   :  { %181 = vmatpush3.bf16.msra.mxu0 %v204_v2  ;;  %v209_v12 = vld [vmem:[%s318_s1 + $0x10] sm:$0xff]   ;;  %v210_v13 = vld [vmem:[%s318_s1 + $0x8] sm:$0xff]   ;;  %v211_v14 = vld [vmem:[%s318_s1] sm:$0xff]   ;;  %s151_s30 = sshll.u32 %s262_s29, 4  ;;  %s152_s30 = int_to_ptr.vmem [resolvable:$true] %s151_s30 }
   0x8   :  { %182 = vmatprep.subr.bf16.mxu0 %v260_v3  ;;  %s216_s4 = scalar_lea.vmem %s152_s30, 128  ;;  %p221_p1 = scmp.lt.s32.totalorder %s152_s30, %s152_s30 }
   0x9   :  { %p217_p0 = scmp.ne.s32.totalorder %s152_s30, %s216_s4  ;;  %p222_p2 = scmp.lt.s32.totalorder %s216_s4, %s216_s4 }
   0xb   :  { %183 = vmatpush3.bf16.msra.mxu0 %v205_v4  ;;  %p223_p3 = por %p222_p2, %p221_p1 }
   0xc   :  { %184 = vmatprep.subr.bf16.mxu0 %v260_v3 }
   0xd   :  { %p224_p4 = pnand %p223_p3, %p217_p0 }
   0xf   :  { %185 = vmatpush3.bf16.msra.mxu0 %v206_v5 }
  0x10   :  { %186 = vmatprep.subr.bf16.mxu0 %v260_v3 }
  0x13   :  { %187 = vmatpush3.bf16.msra.mxu0 %v207_v6 }
  0x14   :  { %188 = vmatprep.subr.bf16.mxu0 %v260_v3 }
  0x17   :  { %189 = vmatpush3.bf16.msra.mxu0 %v208_v11 }
  0x18   :  { %190 = vmatprep.subr.bf16.mxu0 %v260_v3 }
  0x1b   :  { %191 = vmatpush3.bf16.msra.mxu0 %v209_v12 }
  0x1c   :  { %192 = vmatprep.subr.bf16.mxu0 %v260_v3 }
  0x1f   :  { %193 = vmatpush3.bf16.msra.mxu0 %v210_v13 }
  0x20   :  { %194 = vmatprep.subr.bf16.mxu0 %v260_v3 }
  0x23   :  { %195 = vmatpush3.bf16.msra.mxu0 %v211_v14 }
  0x8d   :  { %v19_v7 = vpop.xlane.xlu0 %18 }
  0x8e   :  { %v20_v8 = vsub.f32 %v17_v1, %v19_v7 }
  0x90   :  { %v21_v9 = vmul.f32 1.442695, %v20_v8 }
  0x92   :  { %212 = vpow2.f32 %v21_v9 }
  0x9f   :  { %v213_v10 = vpop.eup %212 }
  0xa0   :  { %23 = vadd.xlane.f32.xlu0 %v213_v10 }
 0x129   :  { %v24_v15 = vpop.xlane.xlu0 %23 }
 0x12a   :  { %214 = vrcp.f32 %v24_v15 }
 0x137   :  { %v215_v16 = vpop.eup %214 }
 0x138   :  { %v27_v17 = vmul.f32 %v215_v16, %v213_v10 }
 0x13a   :  { %v29_v18 = vpack.c.bf16 %v27_v17, %v27_v17  ;;  %28 = vst [vmem:[#allocation4] sm:$0xff] %v27_v17 }
 0x13c   :  { %197 = vmatmul.mubr.bf16.vlgmr.msra.gmra.mxu0 %v29_v18 }
 0x13d   :  { %227 = shalt.err (!%p224_p4)
}
 0x13e   :  { %154 = dma.vmem_to_hbm [thread:$0]  %s152_s30, 128, %s320_s3, [#allocation5]  }
 0x13f   :  { %s263_s6 = smov [#allocation2]  }
 0x140   :  { %s141_s7 = sshll.u32 %s263_s6, 4  ;;  %s142_s7 = int_to_ptr.vmem [resolvable:$true] %s141_s7 }
 0x141   :  { %s236_s8 = scalar_lea.vmem %s142_s7, 128  ;;  %p241_p6 = scmp.lt.s32.totalorder %s142_s7, %s142_s7 }
 0x142   :  { %p237_p5 = scmp.ne.s32.totalorder %s142_s7, %s236_s8  ;;  %p242_p7 = scmp.lt.s32.totalorder %s236_s8, %s236_s8 }
 0x144   :  { %p243_p8 = por %p242_p7, %p241_p6 }
 0x146   :  { %p244_p9 = pnand %p243_p8, %p237_p5 }
 0x1fc   :  { %v128_v19 = vpop.f32.mrf.mxu0 }
 0x1fd   :  { %134 = vst [vmem:[#allocation2] sm:$0xff] %v128_v19 }
 0x1fe   :  { %v198_v20 = vpop.f32.mrf.mxu0 }
 0x1ff   :  { %247 = shalt.err (!%p244_p9)
}
 0x200   :  { %144 = dma.vmem_to_hbm [thread:$0]  %s142_s7, 128, %s319_s2, [#allocation3]   ;;  %v131_v21 = vpop.f32.mrf.mxu0 }
 0x202   :  { %v199_v22 = vpop.f32.mrf.mxu0 }
 0x203   :  { %256 = dma.done.wait [#allocation3], 128  }
 0x204   :  { %257 = vsyncadd [#allocation3], 4294967168 }
 0x205   :  { %258 = dma.done.wait [#allocation5], 128  }
 0x206   :  { %259 = vsyncadd [#allocation5], 4294967168 }
 0x207   :  { %161 = vsyncpa [#allocation3], 1 }
 0x208   :  { %162 = vsyncpa [#allocation5], 1 }

</bundles_post_ra>
